<compile_context>
chip_gen: v5e
topology: v5e:2x2
jax: 0.10.0
libtpu: 0.0.40
codegen_flags: <defaults>
</compile_context>

<pallas_src>
import functools

import jax
import jax.numpy as jnp
from jax import lax
from jax.experimental import pallas as pl
from jax.experimental.pallas import tpu as pltpu


def _round_up(x, m):
    return ((x + m - 1) // m) * m


def _vmem_capacity_bytes():
    """Per-core VMEM capacity; conservative fallback if the query fails."""
    try:
        return int(pltpu.get_tpu_info().vmem_capacity_bytes)
    except Exception:
        return 64 * 1024 * 1024  # v7x per-TensorCore VMEM (smallest of v5e/v6e/v7x)


# ----------------------------------------------------------------------------
# Path 1: VMEM-resident table, one-hot MXU gather.
# ----------------------------------------------------------------------------
def _embed_onehot_kernel(idx_ref, table_ref, out_ref):
    """idx_ref:  VMEM int32 [tile_n, 1]   (this tile's token ids)
       table_ref: VMEM      [V, Dp]       (resident across the whole grid)
       out_ref:   VMEM      [tile_n, Dp]  (current output block)"""
    tile_n = idx_ref.shape[0]
    v = table_ref.shape[0]
    idx = idx_ref[...]                                          # [tile_n, 1]
    cols = lax.broadcasted_iota(jnp.int32, (tile_n, v), 1)      # [tile_n, V]
    one_hot = (cols == idx).astype(jnp.float32)
    # HIGHEST precision => exact f32 row selection (one-hot * exact splits).
    acc = jnp.dot(one_hot, table_ref[...].astype(jnp.float32),
                  preferred_element_type=jnp.float32,
                  precision=lax.Precision.HIGHEST)
    out_ref[...] = acc.astype(out_ref.dtype)


# ----------------------------------------------------------------------------
# Path 2: HBM-resident table, per-row async-DMA gather (large vocab fallback).
# ----------------------------------------------------------------------------
def _embed_dma_kernel(tile_n, idx_ref, table_hbm, out_ref, copy_sem):
    """idx_ref:   SMEM int32 [tile_n]     (this tile's token ids)
       table_hbm: HBM        [V, Dp]      (memory_space=pl.ANY)
       out_ref:   VMEM       [tile_n, Dp] (current output block)
       copy_sem:  single shared DMA semaphore"""

    def row_copy(r):
        row = idx_ref[r]
        return pltpu.make_async_copy(
            table_hbm.at[pl.ds(row, 1), :],
            out_ref.at[pl.ds(r, 1), :],
            copy_sem,
        )

    # Issue all row DMAs for this tile so they are in flight concurrently ...
    def issue(r, carry):
        row_copy(r).start()
        return carry

    lax.fori_loop(0, tile_n, issue, 0, unroll=8)

    # ... then drain them.  Descriptors are rebuilt *identically* (same source
    # row, same destination, same shared semaphore) — each wait decrements the
    # shared sem by one row's worth of bytes.
    def drain(r, carry):
        row_copy(r).wait()
        return carry

    lax.fori_loop(0, tile_n, drain, 0, unroll=8)
    # TODO(synk): cross-grid-step double buffering of the gather (prefetch step
    # i+1's rows before draining step i) needs look-ahead indices; currently
    # the Pallas output pipeline only overlaps writeback with the next gather.


# ----------------------------------------------------------------------------
# Wrapper
# ----------------------------------------------------------------------------
def embedding_forward(indices, table, *, tile_n=None):
    """indices: [B, S] int, table: [V, D] float -> [B, S, D] in table dtype."""
    B, S = indices.shape
    V, D = table.shape
    N = B * S
    itemsize = jnp.dtype(table.dtype).itemsize

    # Lane-dense output stores: pad the embedding dim to a multiple of 128.
    Dp = _round_up(D, 128)
    if Dp != D:
        table = jnp.pad(table, ((0, 0), (0, Dp - D)))

    vmem_cap = _vmem_capacity_bytes()
    table_bytes = V * Dp * itemsize
    # Keep the table resident only if it uses at most ~1/3 of VMEM and the
    # one-hot matmul stays cheap (wasted MXU flops grow linearly with V).
    resident = (table_bytes <= vmem_cap // 3) and (V <= 8192)

    # --- token-axis tile size (amortize ~0.35us/grid-step overhead) ---------
    if tile_n is None:
        tile_n = 512
        budget = vmem_cap // 2 - (table_bytes if resident else 0)
        while tile_n > 8 and 2 * tile_n * Dp * itemsize > budget:
            tile_n //= 2
    tile_n = max(8, _round_up(min(tile_n, _round_up(N, 8)), 8))

    # Flatten + clamp (PyTorch raises on OOB; a raw gather would silently read
    # an arbitrary row).
    idx = jnp.clip(indices.reshape(N).astype(jnp.int32), 0, V - 1)
    n_pad = pl.cdiv(N, tile_n) * tile_n
    if n_pad != N:
        idx = jnp.pad(idx, (0, n_pad - N))        # pad rows gather row 0
    grid = (n_pad // tile_n,)

    vmem_needed = 2 * tile_n * Dp * itemsize + (table_bytes if resident else 0)
    vmem_limit = int(min(max(32 << 20, 2 * vmem_needed), (vmem_cap * 7) // 8))
    cparams = pltpu.CompilerParams(
        dimension_semantics=("parallel",),        # megacore-shard token tiles
        vmem_limit_bytes=vmem_limit,
    )

    if resident:
        out = pl.pallas_call(
            _embed_onehot_kernel,
            out_shape=jax.ShapeDtypeStruct((n_pad, Dp), table.dtype),
            grid=grid,
            in_specs=[
                pl.BlockSpec((tile_n, 1), lambda i: (i, 0)),   # per-tile ids
                pl.BlockSpec((V, Dp), lambda i: (0, 0)),       # resident table
            ],
            out_specs=pl.BlockSpec((tile_n, Dp), lambda i: (i, 0)),
            compiler_params=cparams,
            cost_estimate=pl.CostEstimate(
                flops=2 * n_pad * V * Dp,
                transcendentals=0,
                bytes_accessed=table_bytes + n_pad * Dp * itemsize + n_pad * 4,
            ),
        )(idx.reshape(n_pad, 1), table)
    else:
        out = pl.pallas_call(
            functools.partial(_embed_dma_kernel, tile_n),
            out_shape=jax.ShapeDtypeStruct((n_pad, Dp), table.dtype),
            grid=grid,
            in_specs=[
                pl.BlockSpec((tile_n,), lambda i: (i,),
                             memory_space=pltpu.MemorySpace.SMEM),
                pl.BlockSpec(memory_space=pl.ANY),              # table in HBM
            ],
            out_specs=pl.BlockSpec((tile_n, Dp), lambda i: (i, 0)),
            scratch_shapes=[pltpu.SemaphoreType.DMA],           # one shared sem
            compiler_params=cparams,
            cost_estimate=pl.CostEstimate(
                flops=0,
                transcendentals=0,
                bytes_accessed=2 * n_pad * Dp * itemsize + n_pad * 4,
            ),
        )(idx, table)

    return out[:N, :D].reshape(B, S, D)


if __name__ == "__main__":
    vocab_size = 32
    embed_dim = 128
    batch, seq = 2, 8

    key = jax.random.PRNGKey(0)
    k_tab, k_idx = jax.random.split(key)

    # nn.Embedding default init: weights ~ N(0, 1)
    table = jax.random.normal(k_tab, (vocab_size, embed_dim), dtype=jnp.float32)
    x = jax.random.randint(k_idx, (batch, seq), 0, vocab_size, dtype=jnp.int32)

    out = embedding_forward(x, table)
    out = jax.block_until_ready(out)

    # reference: plain gather
    ref = jnp.take(table, x, axis=0)
    assert out.shape == (batch, seq, embed_dim)
    assert jnp.allclose(out, ref, atol=1e-5), "mismatch vs reference gather"

    print("KERNEL_OK")
</pallas_src>

<mosaic_0001>
module attributes {stable_mosaic.version = 11 : i64} {
  func.func @_embed_onehot_kernel(%arg0: i32, %arg1: memref<16x1xi32, #tpu.memory_space<vmem>>, %arg2: memref<32x128xf32, #tpu.memory_space<vmem>>, %arg3: memref<16x128xf32, #tpu.memory_space<vmem>>) attributes {dimension_semantics = [#tpu.dimension_semantics<parallel>], iteration_bounds = array<i64: 1>, scalar_prefetch = 0 : i64, scratch_operands = 0 : i64, tpu.core_type = #tpu.core_type<tc>, window_params = [{transform_indices = @transform_0, window_bounds = array<i64: 16, 1>}, {pipeline_mode = #tpu.pipeline_mode<synchronous>, transform_indices = @transform_1, window_bounds = array<i64: 32, 128>}, {transform_indices = @transform_2, window_bounds = array<i64: 16, 128>}]} {
    %c0 = arith.constant 0 : index
    %c0_0 = arith.constant 0 : index
    %0 = vector.load %arg1[%c0, %c0_0] : memref<16x1xi32, #tpu.memory_space<vmem>>, vector<16x1xi32>
    %1 = tpu.iota {dimensions = array<i32: 1>} : vector<16x32xi32>
    %2 = vector.broadcast %0 : vector<16x1xi32> to vector<16x32xi32>
    %3 = arith.cmpi eq, %1, %2 : vector<16x32xi32>
    %4 = arith.extui %3 : vector<16x32xi1> to vector<16x32xi32>
    %5 = arith.sitofp %4 : vector<16x32xi32> to vector<16x32xf32>
    %c0_1 = arith.constant 0 : index
    %c0_2 = arith.constant 0 : index
    %6 = vector.load %arg2[%c0_1, %c0_2] : memref<32x128xf32, #tpu.memory_space<vmem>>, vector<32x128xf32>
    %cst = arith.constant dense<0.000000e+00> : vector<16x128xf32>
    %7 = tpu.matmul %5, %6, %cst {dimension_numbers = #tpu.dot_dimension_numbers<[1], [0], [0], [1], [0, 0, 1, 1], [], []>, precision = #tpu.contract_precision<fp32>} : vector<16x32xf32>, vector<32x128xf32>, vector<16x128xf32> -> vector<16x128xf32>
    %c0_3 = arith.constant 0 : index
    %c0_4 = arith.constant 0 : index
    %8 = vector.load %arg3[%c0_3, %c0_4] : memref<16x128xf32, #tpu.memory_space<vmem>>, vector<16x128xf32>
    tpu.vector_store %arg3[%c0_3, %c0_4], %7 {strides = array<i32>} : memref<16x128xf32, #tpu.memory_space<vmem>>, vector<16x128xf32>,
    return
  }
  func.func @transform_0(%arg0: i32) -> (i32, i32) {
    %c0_i32 = arith.constant 0 : i32
    %c0_i32_0 = arith.constant 0 : i32
    return %arg0, %c0_i32 : i32, i32
  }
  func.func @transform_1(%arg0: i32) -> (i32, i32) {
    %c0_i32 = arith.constant 0 : i32
    %c0_i32_0 = arith.constant 0 : i32
    %c0_i32_1 = arith.constant 0 : i32
    return %c0_i32, %c0_i32_0 : i32, i32
  }
  func.func @transform_2(%arg0: i32) -> (i32, i32) {
    %c0_i32 = arith.constant 0 : i32
    %c0_i32_0 = arith.constant 0 : i32
    return %arg0, %c0_i32 : i32, i32
  }
}

</mosaic_0001>

<bundles_post_ra>
// kernel: tpu_custom_call.1
= control target key start
LH: loop header
LB: loop body
LE: loop exit
PB: predicated region body
PF: predicated region fallthrough
CT: control target
= control target key end

     0   :  { %7 = vsyncpa [#allocation3], 0  ;;  %s414_s0 = inlined_call_operand.vmem [shape: s32[16,1], index: 0, kind: input, shape index: {}]   ;;  %s415_s1 = inlined_call_operand.hbm [shape: f32[32,128], index: 1, kind: input, shape index: {}]   ;;  %s416_s2 = inlined_call_operand.hbm [shape: f32[16,128], index: 2, kind: output, shape index: {}]  }
   0x1   :  { %8 = vsyncpa [#allocation4], 0  ;;  %s15_s11 = sshll.u32 %s415_s1, 4  ;;  %s367_s12 = smov [#allocation2]   ;;  %s16_s11 = int_to_ptr.hbm [resolvable:$true] %s15_s11 }
   0x2   :  { %s17_s13 = sshll.u32 %s367_s12, 4  ;;  %s368_s14 = smov 128   ;;  %s18_s13 = int_to_ptr.vmem [resolvable:$true] %s17_s13 }
   0x3   :  { %s369_s15 = smov 8  }
   0x4   :  { %23 = dma.hbm_to_vmem [thread:$0]  %s16_s11, 512, %s18_s13, [#allocation3], %s368_s14, %s368_s14, %s369_s15  }
   0x5   :  { %363 = dma.done.wait [#allocation3], 512  }
   0x6   :  { %364 = vsyncadd [#allocation3], 4294966784  ;;  %v370_v0 = vmov 0   ;;  %v29_v1 = vld [vmem:[%s414_s0 + $0x8] sm:$0xff]  ;;  %v47_v2 = vld [vmem:[#allocation2 + $0x18] sm:$0xff]  ;;  %v30_v27 = vlaneseq  ;;  %vm48_vm0 = vcmask 261120  }
   0x7   :  { %314 = vset.pattern.permute.xlu0 %v370_v0  ;;  %v67_v3 = vand.u32 4294901760, %v47_v2  ;;  %v46_v4 = vld [vmem:[#allocation2 + $0x10] sm:$0xff]  ;;  %v45_v5 = vld [vmem:[#allocation2 + $0x8] sm:$0xff]  ;;  %v28_v12 = vld [vmem:[%s414_s0] sm:$0xff]  ;;  %v371_v30 = vmov 0.0   ;;  %s372_s0 = smov [#allocation5]  }
   0x8   :  { %36 = vperm.xlu0 %314, %v29_v1   ;;  %v69_v6 = vand.u32 4294901760, %v46_v4  ;;  %v71_v7 = vand.u32 4294901760, %v45_v5  ;;  %v44_v21 = vld [vmem:[#allocation2] sm:$0xff]  ;;  %v31_v28 = vand.u32 127, %v30_v27  ;;  %s277_s19 = sshll.u32 %s372_s0, 4  ;;  %s279_s22 = sshll.u32 %s416_s2, 4  ;;  %s278_s19 = int_to_ptr.vmem [resolvable:$true] %s277_s19  ;;  %s280_s22 = int_to_ptr.hbm [resolvable:$true] %s279_s22 }
   0x9   :  { %v105_v8 = vsub.f32 %v47_v2, %v67_v3  ;;  %300 = vmatpush.msra.mxu2 %v67_v3  ;;  %68 = vmatpush.msra.mxu0 %v67_v3  ;;  %v73_v22 = vand.u32 4294901760, %v44_v21 }
   0xa   :  { %v111_v9 = vsub.f32 %v46_v4, %v69_v6  ;;  %v117_v10 = vsub.f32 %v45_v5, %v71_v7 }
   0xb   :  { %v106_v11 = vand.u32 4294901760, %v105_v8  ;;  %301 = vmatpush.msra.mxu2 %v69_v6  ;;  %70 = vmatpush.msra.mxu0 %v69_v6  ;;  %v123_v23 = vsub.f32 %v44_v21, %v73_v22 }
   0xc   :  { %v112_v13 = vand.u32 4294901760, %v111_v9  ;;  %v118_v14 = vand.u32 4294901760, %v117_v10 }
   0xd   :  { %v107_v15 = vsub.f32 %v105_v8, %v106_v11  ;;  %302 = vmatpush.msra.mxu2 %v71_v7  ;;  %72 = vmatpush.msra.mxu0 %v71_v7  ;;  %v124_v24 = vand.u32 4294901760, %v123_v23 }
   0xe   :  { %v113_v16 = vsub.f32 %v111_v9, %v112_v13  ;;  %v119_v17 = vsub.f32 %v117_v10, %v118_v14 }
   0xf   :  { %v108_v18 = vand.u32 4294901760, %v107_v15  ;;  %303 = vmatpush.msra.mxu2 %v73_v22  ;;  %74 = vmatpush.msra.mxu0 %v73_v22  ;;  %v125_v25 = vsub.f32 %v123_v23, %v124_v24 }
  0x10   :  { %33 = vperm.xlu0 %314, %v28_v12   ;;  %v114_v19 = vand.u32 4294901760, %v113_v16  ;;  %v120_v20 = vand.u32 4294901760, %v119_v17 }
  0x11   :  { %304 = vmatpush.msra.mxu3 %v108_v18  ;;  %109 = vmatpush.msra.mxu1 %v108_v18  ;;  %v126_v26 = vand.u32 4294901760, %v125_v25 }
  0x12   :  { %151 = vmatpush.msrb.mxu2 %v105_v8  ;;  %220 = vmatpush.msrb.mxu0 %v106_v11 }
  0x13   :  { %305 = vmatpush.msra.mxu3 %v114_v19  ;;  %115 = vmatpush.msra.mxu1 %v114_v19 }
  0x14   :  { %154 = vmatpush.msrb.mxu2 %v111_v9  ;;  %224 = vmatpush.msrb.mxu0 %v112_v13 }
  0x15   :  { %306 = vmatpush.msra.mxu3 %v120_v20  ;;  %121 = vmatpush.msra.mxu1 %v120_v20 }
  0x16   :  { %157 = vmatpush.msrb.mxu2 %v117_v10  ;;  %228 = vmatpush.msrb.mxu0 %v118_v14 }
  0x17   :  { %307 = vmatpush.msra.mxu3 %v126_v26  ;;  %127 = vmatpush.msra.mxu1 %v126_v26 }
  0x18   :  { %160 = vmatpush.msrb.mxu2 %v123_v23  ;;  %232 = vmatpush.msrb.mxu0 %v124_v24 }
  0x19   :  { %185 = vmatpush.msrb.mxu3 %v67_v3  ;;  %255 = vmatpush.msrb.mxu1 %v67_v3 }
  0x1b   :  { %187 = vmatpush.msrb.mxu3 %v69_v6  ;;  %257 = vmatpush.msrb.mxu1 %v69_v6 }
  0x1d   :  { %189 = vmatpush.msrb.mxu3 %v71_v7  ;;  %259 = vmatpush.msrb.mxu1 %v71_v7 }
  0x1f   :  { %191 = vmatpush.msrb.mxu3 %v73_v22  ;;  %261 = vmatpush.msrb.mxu1 %v73_v22 }
  0x7a   :  { %v37_v29 = vpop.permute.xlu0 %36 }
  0x7b   :  { %vm39_vm1 = vcmp.eq.s32.totalorder %v31_v28, %v37_v29 }
  0x7c   :  { %v293_v31 = vsel %vm39_vm1, 1.0, %v371_v30 }
  0x7d   :  { %v53_v32 = vsel %vm48_vm0, %v293_v31, 0  ;;  %295 = vmatmul.msk.f32.vlgmr.msra.gmra.mxu3 %vm48_vm0, %v293_v31 }
  0x7e   :  { %v84_v33 = vsub.f32 %v53_v32, %v53_v32 }
  0x80   :  { %v85_v34 = vand.u32 4294901760, %v84_v33 }
  0x82   :  { %v34_v35 = vpop.permute.xlu0 %33  ;;  %v86_v36 = vsub.f32 %v84_v33, %v85_v34 }
  0x83   :  { %vm38_vm2 = vcmp.eq.s32.totalorder %v31_v28, %v34_v35 }
  0x84   :  { %v292_v37 = vsel %vm38_vm2, 1.0, %v371_v30  ;;  %v87_v38 = vand.u32 4294901760, %v86_v36 }
  0x85   :  { %v50_v39 = vsel %vm48_vm0, %v292_v37, 0  ;;  %294 = vmatmul.msk.f32.vlgmr.msra.gmra.mxu1 %vm48_vm0, %v292_v37 }
  0x86   :  { %v76_v40 = vsub.f32 %v50_v39, %v50_v39  ;;  %88 = vmatmul.f32.vlgmr.msra.gmra.mxu2 %v87_v38 }
  0x88   :  { %v77_v41 = vand.u32 4294901760, %v76_v40 }
  0x8a   :  { %195 = vmatmul.f32.vlgmr.msrb.gmra.mxu3 %v77_v41  ;;  %v78_v42 = vsub.f32 %v76_v40, %v77_v41 }
  0x8c   :  { %v79_v43 = vand.u32 4294901760, %v78_v42 }
  0x8d   :  { %298 = vmatmul.msk.f32.vlgmr.msrb.gmra.mxu1 %vm48_vm0, %v292_v37 }
  0x8e   :  { %80 = vmatmul.f32.vlgmr.msra.gmra.mxu0 %v79_v43  ;;  %163 = vmatmul.f32.vlgmr.msrb.gmra.mxu2 %v76_v40 }
  0x92   :  { %201 = vmatmul.f32.gmra.mxu3 %v85_v34 }
  0x95   :  { %299 = vmatmul.msk.f32.gmra.mxu1 %vm48_vm0, %v293_v31 }
  0x96   :  { %168 = vmatmul.f32.gmra.mxu2 %v84_v33  ;;  %296 = vmatmul.msk.f32.vlgmr.msrb.gmra.mxu0 %vm48_vm0, %v292_v37 }
  0x9e   :  { %297 = vmatmul.msk.f32.gmra.mxu0 %vm48_vm0, %v293_v31 }
 0x100   :  { %v134_v44 = vpop.f32.mrf.mxu3 }
 0x102   :  { %v130_v46 = vpop.f32.mrf.mxu1 }
 0x109   :  { %v89_v45 = vpop.f32.mrf.mxu2 }
 0x10a   :  { %v264_v54 = vpop.f32.mrf.mxu1  ;;  %v135_v56 = vadd.f32 %v134_v44, %v89_v45 }
 0x10b   :  { %v81_v47 = vpop.f32.mrf.mxu0 }
 0x10c   :  { %v131_v48 = vadd.f32 %v130_v46, %v81_v47 }
 0x10d   :  { %v196_v49 = vpop.f32.mrf.mxu3 }
 0x111   :  { %v164_v50 = vpop.f32.mrf.mxu2 }
 0x112   :  { %v165_v51 = vadd.f32 %v164_v50, %v131_v48  ;;  %v268_v0 = vpop.f32.mrf.mxu1 }
 0x113   :  { %v235_v52 = vpop.f32.mrf.mxu0 }
 0x114   :  { %v197_v53 = vadd.f32 %v196_v49, %v165_v51 }
 0x115   :  { %v202_v60 = vpop.f32.mrf.mxu3 }
 0x116   :  { %v236_v55 = vadd.f32 %v235_v52, %v197_v53 }
 0x118   :  { %v265_v57 = vadd.f32 %v264_v54, %v236_v55 }
 0x119   :  { %v169_v58 = vpop.f32.mrf.mxu2 }
 0x11a   :  { %271 = vst [vmem:[#allocation5] sm:$0xff] %v265_v57  ;;  %v170_v59 = vadd.f32 %v169_v58, %v135_v56 }
 0x11b   :  { %v239_v62 = vpop.f32.mrf.mxu0 }
 0x11c   :  { %v203_v61 = vadd.f32 %v202_v60, %v170_v59 }
 0x11e   :  { %v240_v63 = vadd.f32 %v239_v62, %v203_v61 }
 0x120   :  { %v269_v1 = vadd.f32 %v268_v0, %v240_v63 }
 0x122   :  { %272 = vst [vmem:[#allocation5 + $0x8] sm:$0xff] %v269_v1 }
 0x123   :  { %285 = dma.vmem_to_hbm [thread:$0]  %s278_s19, 256, %s280_s22, [#allocation4], %s368_s14, %s368_s14, %s369_s15  }
 0x124   :  { %365 = dma.done.wait [#allocation4], 256  }
 0x125   :  { %366 = vsyncadd [#allocation4], 4294967040 }
 0x126   :  { %290 = vsyncpa [#allocation3], 1 }
 0x127   :  { %291 = vsyncpa [#allocation4], 1 }

</bundles_post_ra>
